<compile_context>
chip_gen: v6e
topology: v6e:2x2x1
jax: 0.10.0
libtpu: 0.0.40
codegen_flags: <defaults>
</compile_context>

<pallas_src>
import math
import jax
import jax.numpy as jnp
from jax.experimental import pallas as pl
from jax.experimental.pallas import tpu as pltpu


def mlp_kernel(x_ref, w1_ref, b1_ref, w2_ref, b2_ref,
               w3_ref, b3_ref, w4_ref, b4_ref, o_ref):
    # hidden1 + ReLU
    h = jnp.dot(x_ref[...], w1_ref[...], preferred_element_type=jnp.float32) + b1_ref[...]
    h = jnp.maximum(h, 0.0)
    # hidden2 + ReLU
    h = jnp.dot(h, w2_ref[...], preferred_element_type=jnp.float32) + b2_ref[...]
    h = jnp.maximum(h, 0.0)
    # hidden3 + ReLU
    h = jnp.dot(h, w3_ref[...], preferred_element_type=jnp.float32) + b3_ref[...]
    h = jnp.maximum(h, 0.0)
    # output linear (no activation)
    o_ref[...] = (jnp.dot(h, w4_ref[...], preferred_element_type=jnp.float32)
                  + b4_ref[...]).astype(o_ref.dtype)


def _round_up(n, m):
    return ((n + m - 1) // m) * m


def multiclass_forward(x, params, block_b=None):
    """Fused MLP forward. x: [B, 30] fp32. Returns [B, 2] fp32."""
    (w1, b1), (w2, b2), (w3, b3), (w4, b4) = params
    B, K = x.shape
    out_dim = w4.shape[1]

    if block_b is None:
        # Large multiple-of-8 batch tile, capped to what the problem needs.
        # 2048 rows: x tile ~240 KB double-buffered + [2048,128] fp32 hidden
        # ~1 MB -> comfortably inside scoped VMEM on v5e/v6e/v7x.
        block_b = min(2048, _round_up(B, 8))
    block_b = max(8, _round_up(block_b, 8))

    grid = (pl.cdiv(B, block_b),)

    # Batch-tiled x / output.
    x_spec = pl.BlockSpec((block_b, K), lambda i: (i, 0))
    out_spec = pl.BlockSpec((block_b, out_dim), lambda i: (i, 0))

    # Weights/biases: full-extent blocks with constant index maps -> fetched once,
    # VMEM-resident for every grid step (no per-step re-DMA).
    def const_spec(arr):
        return pl.BlockSpec(arr.shape, lambda i: (0, 0))

    in_specs = [x_spec,
                const_spec(w1), const_spec(b1),
                const_spec(w2), const_spec(b2),
                const_spec(w3), const_spec(b3),
                const_spec(w4), const_spec(b4)]

    return pl.pallas_call(
        mlp_kernel,
        out_shape=jax.ShapeDtypeStruct((B, out_dim), jnp.float32),
        grid=grid,
        in_specs=in_specs,
        out_specs=out_spec,
        compiler_params=pltpu.CompilerParams(
            dimension_semantics=("parallel",)),
    )(x, w1, b1, w2, b2, w3, b3, w4, b4)


# ---- init matching the PyTorch module's explicit init calls ----
# kaiming_uniform_(w, nonlinearity='relu'): bound = sqrt(2) * sqrt(3 / fan_in) = sqrt(6 / fan_in)
# xavier_uniform_(w): bound = sqrt(6 / (fan_in + fan_out)); biases zero-initialized.
def _kaiming_uniform(key, fan_in, fan_out):
    bound = math.sqrt(6.0 / fan_in)
    return jax.random.uniform(key, (fan_in, fan_out), jnp.float32, -bound, bound)


def _xavier_uniform(key, fan_in, fan_out):
    bound = math.sqrt(6.0 / (fan_in + fan_out))
    return jax.random.uniform(key, (fan_in, fan_out), jnp.float32, -bound, bound)


def init_params(key, l1=128, l2=32, l3=8):
    k1, k2, k3, k4 = jax.random.split(key, 4)
    w1 = _kaiming_uniform(k1, 30, l1)
    b1 = jnp.zeros((1, l1), jnp.float32)
    w2 = _kaiming_uniform(k2, l1, l2)
    b2 = jnp.zeros((1, l2), jnp.float32)
    w3 = _kaiming_uniform(k3, l2, l3)
    b3 = jnp.zeros((1, l3), jnp.float32)
    w4 = _xavier_uniform(k4, l3, 2)
    b4 = jnp.zeros((1, 2), jnp.float32)
    return ((w1, b1), (w2, b2), (w3, b3), (w4, b4))


def reference_forward(x, params):
    (w1, b1), (w2, b2), (w3, b3), (w4, b4) = params
    h = jnp.maximum(x @ w1 + b1, 0.0)
    h = jnp.maximum(h @ w2 + b2, 0.0)
    h = jnp.maximum(h @ w3 + b3, 0.0)
    return h @ w4 + b4


if __name__ == "__main__":
    key = jax.random.PRNGKey(0)
    k_params, k_x, k_x2 = jax.random.split(key, 3)

    params = init_params(k_params)

    # Small canonical test: B=8 rows of 30 features.
    B = 8
    x = jax.random.normal(k_x, (B, 30), jnp.float32)
    out = jax.block_until_ready(multiclass_forward(x, params))
    ref = reference_forward(x, params)
    assert out.shape == (B, 2)
    assert jnp.allclose(out, ref, atol=1e-5, rtol=1e-5)

    # Exercise the batch grid (multiple steps + a partial final block).
    B2 = 1000
    x2 = jax.random.normal(k_x2, (B2, 30), jnp.float32)
    out2 = jax.block_until_ready(multiclass_forward(x2, params, block_b=256))
    ref2 = reference_forward(x2, params)
    assert out2.shape == (B2, 2)
    assert jnp.allclose(out2, ref2, atol=1e-5, rtol=1e-5)

    print("KERNEL_OK")
</pallas_src>

<mosaic_0001>
module attributes {stable_mosaic.version = 11 : i64} {
  func.func @mlp_kernel(%arg0: i32, %arg1: memref<8x30xf32, #tpu.memory_space<vmem>>, %arg2: memref<30x128xf32, #tpu.memory_space<vmem>>, %arg3: memref<1x128xf32, #tpu.memory_space<vmem>>, %arg4: memref<128x32xf32, #tpu.memory_space<vmem>>, %arg5: memref<1x32xf32, #tpu.memory_space<vmem>>, %arg6: memref<32x8xf32, #tpu.memory_space<vmem>>, %arg7: memref<1x8xf32, #tpu.memory_space<vmem>>, %arg8: memref<8x2xf32, #tpu.memory_space<vmem>>, %arg9: memref<1x2xf32, #tpu.memory_space<vmem>>, %arg10: memref<8x2xf32, #tpu.memory_space<vmem>>) attributes {dimension_semantics = [#tpu.dimension_semantics<parallel>], iteration_bounds = array<i64: 1>, scalar_prefetch = 0 : i64, scratch_operands = 0 : i64, tpu.core_type = #tpu.core_type<tc>, window_params = [{transform_indices = @transform_0, window_bounds = array<i64: 8, 30>}, {pipeline_mode = #tpu.pipeline_mode<synchronous>, transform_indices = @transform_1, window_bounds = array<i64: 30, 128>}, {pipeline_mode = #tpu.pipeline_mode<synchronous>, transform_indices = @transform_2, window_bounds = array<i64: 1, 128>}, {pipeline_mode = #tpu.pipeline_mode<synchronous>, transform_indices = @transform_3, window_bounds = array<i64: 128, 32>}, {pipeline_mode = #tpu.pipeline_mode<synchronous>, transform_indices = @transform_4, window_bounds = array<i64: 1, 32>}, {pipeline_mode = #tpu.pipeline_mode<synchronous>, transform_indices = @transform_5, window_bounds = array<i64: 32, 8>}, {pipeline_mode = #tpu.pipeline_mode<synchronous>, transform_indices = @transform_6, window_bounds = array<i64: 1, 8>}, {pipeline_mode = #tpu.pipeline_mode<synchronous>, transform_indices = @transform_7, window_bounds = array<i64: 8, 2>}, {pipeline_mode = #tpu.pipeline_mode<synchronous>, transform_indices = @transform_8, window_bounds = array<i64: 1, 2>}, {transform_indices = @transform_9, window_bounds = array<i64: 8, 2>}]} {
    %c0 = arith.constant 0 : index
    %c0_0 = arith.constant 0 : index
    %0 = vector.load %arg1[%c0, %c0_0] : memref<8x30xf32, #tpu.memory_space<vmem>>, vector<8x30xf32>
    %c0_1 = arith.constant 0 : index
    %c0_2 = arith.constant 0 : index
    %1 = vector.load %arg2[%c0_1, %c0_2] : memref<30x128xf32, #tpu.memory_space<vmem>>, vector<30x128xf32>
    %cst = arith.constant dense<0.000000e+00> : vector<8x128xf32>
    %2 = tpu.matmul %0, %1, %cst {dimension_numbers = #tpu.dot_dimension_numbers<[1], [0], [0], [1], [0, 0, 1, 1], [], []>} : vector<8x30xf32>, vector<30x128xf32>, vector<8x128xf32> -> vector<8x128xf32>
    %c0_3 = arith.constant 0 : index
    %c0_4 = arith.constant 0 : index
    %3 = vector.load %arg3[%c0_3, %c0_4] : memref<1x128xf32, #tpu.memory_space<vmem>>, vector<1x128xf32>
    %4 = vector.broadcast %3 : vector<1x128xf32> to vector<8x128xf32>
    %5 = arith.addf %2, %4 : vector<8x128xf32>
    %cst_5 = arith.constant 0.000000e+00 : f32
    %6 = vector.broadcast %cst_5 : f32 to vector<8x128xf32>
    %7 = arith.maximumf %5, %6 : vector<8x128xf32>
    %c0_6 = arith.constant 0 : index
    %c0_7 = arith.constant 0 : index
    %8 = vector.load %arg4[%c0_6, %c0_7] : memref<128x32xf32, #tpu.memory_space<vmem>>, vector<128x32xf32>
    %cst_8 = arith.constant dense<0.000000e+00> : vector<8x32xf32>
    %9 = tpu.matmul %7, %8, %cst_8 {dimension_numbers = #tpu.dot_dimension_numbers<[1], [0], [0], [1], [0, 0, 1, 1], [], []>} : vector<8x128xf32>, vector<128x32xf32>, vector<8x32xf32> -> vector<8x32xf32>
    %c0_9 = arith.constant 0 : index
    %c0_10 = arith.constant 0 : index
    %10 = vector.load %arg5[%c0_9, %c0_10] : memref<1x32xf32, #tpu.memory_space<vmem>>, vector<1x32xf32>
    %11 = vector.broadcast %10 : vector<1x32xf32> to vector<8x32xf32>
    %12 = arith.addf %9, %11 : vector<8x32xf32>
    %cst_11 = arith.constant 0.000000e+00 : f32
    %13 = vector.broadcast %cst_11 : f32 to vector<8x32xf32>
    %14 = arith.maximumf %12, %13 : vector<8x32xf32>
    %c0_12 = arith.constant 0 : index
    %c0_13 = arith.constant 0 : index
    %15 = vector.load %arg6[%c0_12, %c0_13] : memref<32x8xf32, #tpu.memory_space<vmem>>, vector<32x8xf32>
    %cst_14 = arith.constant dense<0.000000e+00> : vector<8x8xf32>
    %16 = tpu.matmul %14, %15, %cst_14 {dimension_numbers = #tpu.dot_dimension_numbers<[1], [0], [0], [1], [0, 0, 1, 1], [], []>} : vector<8x32xf32>, vector<32x8xf32>, vector<8x8xf32> -> vector<8x8xf32>
    %c0_15 = arith.constant 0 : index
    %c0_16 = arith.constant 0 : index
    %17 = vector.load %arg7[%c0_15, %c0_16] : memref<1x8xf32, #tpu.memory_space<vmem>>, vector<1x8xf32>
    %18 = vector.broadcast %17 : vector<1x8xf32> to vector<8x8xf32>
    %19 = arith.addf %16, %18 : vector<8x8xf32>
    %cst_17 = arith.constant 0.000000e+00 : f32
    %20 = vector.broadcast %cst_17 : f32 to vector<8x8xf32>
    %21 = arith.maximumf %19, %20 : vector<8x8xf32>
    %c0_18 = arith.constant 0 : index
    %c0_19 = arith.constant 0 : index
    %22 = vector.load %arg8[%c0_18, %c0_19] : memref<8x2xf32, #tpu.memory_space<vmem>>, vector<8x2xf32>
    %cst_20 = arith.constant dense<0.000000e+00> : vector<8x2xf32>
    %23 = tpu.matmul %21, %22, %cst_20 {dimension_numbers = #tpu.dot_dimension_numbers<[1], [0], [0], [1], [0, 0, 1, 1], [], []>} : vector<8x8xf32>, vector<8x2xf32>, vector<8x2xf32> -> vector<8x2xf32>
    %c0_21 = arith.constant 0 : index
    %c0_22 = arith.constant 0 : index
    %24 = vector.load %arg9[%c0_21, %c0_22] : memref<1x2xf32, #tpu.memory_space<vmem>>, vector<1x2xf32>
    %25 = vector.broadcast %24 : vector<1x2xf32> to vector<8x2xf32>
    %26 = arith.addf %23, %25 : vector<8x2xf32>
    %c0_23 = arith.constant 0 : index
    %c0_24 = arith.constant 0 : index
    %27 = vector.load %arg10[%c0_23, %c0_24] : memref<8x2xf32, #tpu.memory_space<vmem>>, vector<8x2xf32>
    tpu.vector_store %arg10[%c0_23, %c0_24], %26 {strides = array<i32>} : memref<8x2xf32, #tpu.memory_space<vmem>>, vector<8x2xf32>,
    return
  }
  func.func @transform_0(%arg0: i32) -> (i32, i32) {
    %c0_i32 = arith.constant 0 : i32
    %c0_i32_0 = arith.constant 0 : i32
    return %arg0, %c0_i32 : i32, i32
  }
  func.func @transform_1(%arg0: i32) -> (i32, i32) {
    %c0_i32 = arith.constant 0 : i32
    %c0_i32_0 = arith.constant 0 : i32
    %c0_i32_1 = arith.constant 0 : i32
    return %c0_i32, %c0_i32_0 : i32, i32
  }
  func.func @transform_2(%arg0: i32) -> (i32, i32) {
    %c0_i32 = arith.constant 0 : i32
    %c0_i32_0 = arith.constant 0 : i32
    %c0_i32_1 = arith.constant 0 : i32
    return %c0_i32, %c0_i32_0 : i32, i32
  }
  func.func @transform_3(%arg0: i32) -> (i32, i32) {
    %c0_i32 = arith.constant 0 : i32
    %c0_i32_0 = arith.constant 0 : i32
    %c0_i32_1 = arith.constant 0 : i32
    return %c0_i32, %c0_i32_0 : i32, i32
  }
  func.func @transform_4(%arg0: i32) -> (i32, i32) {
    %c0_i32 = arith.constant 0 : i32
    %c0_i32_0 = arith.constant 0 : i32
    %c0_i32_1 = arith.constant 0 : i32
    return %c0_i32, %c0_i32_0 : i32, i32
  }
  func.func @transform_5(%arg0: i32) -> (i32, i32) {
    %c0_i32 = arith.constant 0 : i32
    %c0_i32_0 = arith.constant 0 : i32
    %c0_i32_1 = arith.constant 0 : i32
    return %c0_i32, %c0_i32_0 : i32, i32
  }
  func.func @transform_6(%arg0: i32) -> (i32, i32) {
    %c0_i32 = arith.constant 0 : i32
    %c0_i32_0 = arith.constant 0 : i32
    %c0_i32_1 = arith.constant 0 : i32
    return %c0_i32, %c0_i32_0 : i32, i32
  }
  func.func @transform_7(%arg0: i32) -> (i32, i32) {
    %c0_i32 = arith.constant 0 : i32
    %c0_i32_0 = arith.constant 0 : i32
    %c0_i32_1 = arith.constant 0 : i32
    return %c0_i32, %c0_i32_0 : i32, i32
  }
  func.func @transform_8(%arg0: i32) -> (i32, i32) {
    %c0_i32 = arith.constant 0 : i32
    %c0_i32_0 = arith.constant 0 : i32
    %c0_i32_1 = arith.constant 0 : i32
    return %c0_i32, %c0_i32_0 : i32, i32
  }
  func.func @transform_9(%arg0: i32) -> (i32, i32) {
    %c0_i32 = arith.constant 0 : i32
    %c0_i32_0 = arith.constant 0 : i32
    return %arg0, %c0_i32 : i32, i32
  }
}

</mosaic_0001>

<bundles_post_ra>
// kernel: tpu_custom_call.1
= control target key start
LH: loop header
LB: loop body
LE: loop exit
PB: predicated region body
PF: predicated region fallthrough
CT: control target
= control target key end

     0   :  { %vm48_vm0 = vcmask 1045504   ;;  %v492_v0 = vmov 0.0   ;;  %vm493_vm1 = vmmov 0   ;;  %vm44_vm2 = vcmask 244736   ;;  %s670_s1 = inlined_call_operand.vmem [shape: f32[30,128], index: 1, kind: input, shape index: {}]   ;;  %s671_s3 = inlined_call_operand.vmem [shape: f32[128,32], index: 3, kind: input, shape index: {}]   ;;  %s672_s0 = inlined_call_operand.vmem [shape: f32[8,30], index: 0, kind: input, shape index: {}]   ;;  %s673_s5 = inlined_call_operand.vmem [shape: f32[32,8], index: 5, kind: input, shape index: {}]   ;;  %s674_s2 = inlined_call_operand.vmem [shape: f32[1,128], index: 2, kind: input, shape index: {}]   ;;  %s675_s4 = inlined_call_operand.vmem [shape: f32[1,32], index: 4, kind: input, shape index: {}]   ;;  %s676_s7 = inlined_call_operand.vmem [shape: f32[8,2], index: 7, kind: input, shape index: {}]   ;;  %s677_s6 = inlined_call_operand.vmem [shape: f32[1,8], index: 6, kind: input, shape index: {}]   ;;  %s678_s8 = inlined_call_operand.vmem [shape: f32[1,2], index: 8, kind: input, shape index: {}]   ;;  %s679_s9 = inlined_call_operand.vmem [shape: f32[8,2], index: 9, kind: output, shape index: {}]  }
   0x1   :  { %428 = vmatprep.subr.mxu0 %v492_v0  ;;  %v36_v1 = vld [vmem:[%s670_s1 + $0x18] sm:$0x3f]  ;;  %v35_v2 = vld [vmem:[%s670_s1 + $0x10] sm:$0xff]  ;;  %436 = vmatprep.mubr.msk.f32.mxu0 %vm493_vm1, %v492_v0  ;;  %v34_v4 = vld [vmem:[%s670_s1 + $0x8] sm:$0xff]  ;;  %vm228_vm3 = vcmask 261120   ;;  %vm311_vm4 = vcmask 64512  }
   0x2   :  { %429 = vmatpush3.msk.msra.mxu0 %vm48_vm0, %v36_v1  ;;  %439 = vmatprep.subr.mxu1 %v492_v0  ;;  %v138_v3 = vld [vmem:[%s671_s3 + $0x78] sm:$0xff]  ;;  %v137_v5 = vld [vmem:[%s671_s3 + $0x70] sm:$0xff]  ;;  %v136_v6 = vld [vmem:[%s671_s3 + $0x68] sm:$0xff]  ;;  %vm385_vm5 = vcmask 15360  }
   0x3   :  { %430 = vmatprep.subr.mxu0 %v492_v0  ;;  %440 = vmatpush3.msra.mxu1 %v138_v3  ;;  %v33_v7 = vld [vmem:[%s670_s1] sm:$0xff]  ;;  %v134_v10 = vld [vmem:[%s671_s3 + $0x58] sm:$0xff]  ;;  %v133_v11 = vld [vmem:[%s671_s3 + $0x50] sm:$0xff] }
   0x4   :  { %431 = vmatpush3.msra.mxu0 %v35_v2  ;;  %441 = vmatprep.subr.mxu1 %v492_v0  ;;  %v32_v8 = vld [vmem:[%s672_s0] sm:$0xff]  ;;  %v132_v12 = vld [vmem:[%s671_s3 + $0x48] sm:$0xff]  ;;  %v130_v14 = vld [vmem:[%s671_s3 + $0x38] sm:$0xff] }
   0x5   :  { %432 = vmatprep.subr.mxu0 %v492_v0  ;;  %442 = vmatpush3.msra.mxu1 %v137_v5  ;;  %v135_v9 = vld [vmem:[%s671_s3 + $0x60] sm:$0xff]  ;;  %v129_v15 = vld [vmem:[%s671_s3 + $0x30] sm:$0xff]  ;;  %v128_v16 = vld [vmem:[%s671_s3 + $0x28] sm:$0xff] }
   0x6   :  { %433 = vmatpush3.msra.mxu0 %v34_v4  ;;  %443 = vmatprep.subr.mxu1 %v492_v0  ;;  %v131_v13 = vld [vmem:[%s671_s3 + $0x40] sm:$0xff]  ;;  %v126_v18 = vld [vmem:[%s671_s3 + $0x18] sm:$0xff]  ;;  %v125_v19 = vld [vmem:[%s671_s3 + $0x10] sm:$0xff] }
   0x7   :  { %434 = vmatprep.subr.mxu0 %v492_v0  ;;  %444 = vmatpush3.msra.mxu1 %v136_v6  ;;  %v127_v17 = vld [vmem:[%s671_s3 + $0x20] sm:$0xff]  ;;  %v124_v20 = vld [vmem:[%s671_s3 + $0x8] sm:$0xff]  ;;  %v220_v22 = vld [vmem:[%s673_s5 + $0x18] sm:$0xff] }
   0x8   :  { %435 = vmatpush3.msra.mxu0 %v33_v7  ;;  %445 = vmatprep.subr.mxu1 %v492_v0  ;;  %v123_v21 = vld [vmem:[%s671_s3] sm:$0xff]  ;;  %v219_v28 = vld [vmem:[%s673_s5 + $0x10] sm:$0xff]  ;;  %v218_v29 = vld [vmem:[%s673_s5 + $0x8] sm:$0xff] }
   0x9   :  { %437 = vmatmul.mubr.msk.f32.vlgmr.msra.gmra.mxu0 %vm44_vm2, %v32_v8  ;;  %446 = vmatpush3.msra.mxu1 %v135_v9  ;;  %v391_v23 = vld [vmem:[%s674_s2] ss:$0 sm:$0xff] }
   0xa   :  { %447 = vmatprep.subr.mxu1 %v492_v0  ;;  %471 = vmatprep.mubr.msk.f32.mxu1 %vm493_vm1, %v492_v0  ;;  %v217_v30 = vld [vmem:[%s673_s5] sm:$0xff] }
   0xb   :  { %448 = vmatpush3.msra.mxu1 %v134_v10  ;;  %474 = vmatprep.subr.mxu0 %v492_v0  ;;  %v394_v31 = vld [vmem:[%s675_s4] ss:$0 sm:$0xff] }
   0xc   :  { %449 = vmatprep.subr.mxu1 %v492_v0  ;;  %482 = vmatprep.mubr.msk.f32.mxu0 %vm493_vm1, %v492_v0  ;;  %v303_v36 = vld [vmem:[%s676_s7] sm:$0xff] }
   0xd   :  { %450 = vmatpush3.msra.mxu1 %v133_v11  ;;  %475 = vmatpush3.msra.mxu0 %v220_v22  ;;  %v395_v37 = vld [vmem:[%s677_s6] ss:$0 sm:$0xff] }
   0xe   :  { %451 = vmatprep.subr.mxu1 %v492_v0  ;;  %476 = vmatprep.subr.mxu0 %v492_v0  ;;  %v397_v42 = vld [vmem:[%s678_s8] ss:$0 sm:$0xff] }
   0xf   :  { %452 = vmatpush3.msra.mxu1 %v132_v12  ;;  %477 = vmatpush3.msra.mxu0 %v219_v28 }
  0x10   :  { %453 = vmatprep.subr.mxu1 %v492_v0  ;;  %478 = vmatprep.subr.mxu0 %v492_v0 }
  0x11   :  { %454 = vmatpush3.msra.mxu1 %v131_v13  ;;  %479 = vmatpush3.msra.mxu0 %v218_v29 }
  0x12   :  { %455 = vmatprep.subr.mxu1 %v492_v0  ;;  %480 = vmatprep.subr.mxu0 %v492_v0 }
  0x13   :  { %456 = vmatpush3.msra.mxu1 %v130_v14  ;;  %481 = vmatpush3.msra.mxu0 %v217_v30 }
  0x14   :  { %457 = vmatprep.subr.mxu1 %v492_v0  ;;  %485 = vmatprep.subr.mxu0 %v492_v0 }
  0x15   :  { %458 = vmatpush3.msra.mxu1 %v129_v15 }
  0x16   :  { %459 = vmatprep.subr.mxu1 %v492_v0 }
  0x17   :  { %460 = vmatpush3.msra.mxu1 %v128_v16 }
  0x18   :  { %461 = vmatprep.subr.mxu1 %v492_v0 }
  0x19   :  { %462 = vmatpush3.msra.mxu1 %v127_v17 }
  0x1a   :  { %463 = vmatprep.subr.mxu1 %v492_v0 }
  0x1b   :  { %464 = vmatpush3.msra.mxu1 %v126_v18 }
  0x1c   :  { %465 = vmatprep.subr.mxu1 %v492_v0 }
  0x1d   :  { %466 = vmatpush3.msra.mxu1 %v125_v19 }
  0x1e   :  { %467 = vmatprep.subr.mxu1 %v492_v0 }
  0x1f   :  { %468 = vmatpush3.msra.mxu1 %v124_v20 }
  0x20   :  { %469 = vmatprep.subr.mxu1 %v492_v0 }
  0x21   :  { %470 = vmatpush3.msra.mxu1 %v123_v21 }
  0xc9   :  { %v118_v24 = vpop.f32.mrf.mxu0 }
  0xca   :  { %v119_v25 = vadd.f32 %v391_v23, %v118_v24 }
  0xcb   :  { %v438_v26 = vpop.f32.mrf.mxu0 }
  0xcc   :  { %v122_v27 = vmax.f32 %v119_v25, 0.0 }
  0xce   :  { %472 = vmatmul.mubr.f32.vlgmr.msra.gmra.mxu1 %v122_v27 }
 0x18e   :  { %v212_v32 = vpop.f32.mrf.mxu1 }
 0x18f   :  { %v213_v33 = vadd.f32 %v394_v31, %v212_v32 }
 0x190   :  { %v473_v34 = vpop.f32.mrf.mxu1 }
 0x191   :  { %v216_v35 = vmax.f32 %v213_v33, 0.0 }
 0x193   :  { %483 = vmatmul.mubr.msk.f32.vlgmr.msra.gmra.mxu0 %vm228_vm3, %v216_v35 }
 0x194   :  { %487 = vmatprep.mubr.msk.f32.mxu0 %vm493_vm1, %v492_v0  ;;  %486 = vmatpush3.msra.mxu0 %v303_v36 }
 0x253   :  { %v298_v38 = vpop.f32.mrf.mxu0 }
 0x254   :  { %v299_v39 = vadd.f32 %v395_v37, %v298_v38 }
 0x255   :  { %v484_v40 = vpop.f32.mrf.mxu0 }
 0x256   :  { %v302_v41 = vmax.f32 %v299_v39, 0.0 }
 0x258   :  { %488 = vmatmul.mubr.msk.f32.vlgmr.msra.gmra.mxu0 %vm311_vm4, %v302_v41 }
 0x318   :  { %v381_v43 = vpop.f32.mrf.mxu0 }
 0x319   :  { %v382_v44 = vadd.f32 %v397_v42, %v381_v43 }
 0x31a   :  { %v489_v45 = vpop.f32.mrf.mxu0 }
 0x31b   :  { %386 = vst.msk [vmem:[%s679_s9] sm:$0xff] %vm385_vm5, %v382_v44 }

</bundles_post_ra>
